<compile_context>
chip_gen: v7x
topology: tpu7x:2x2x1
jax: 0.10.0
libtpu: 0.0.40
codegen_flags: <defaults>
</compile_context>

<pallas_src>
import math
import functools

import jax
import jax.numpy as jnp
import numpy as np
from jax.experimental import pallas as pl
from jax.experimental.pallas import tpu as pltpu


# ----------------------------- in-kernel math -------------------------------

_INV_SQRT2 = 1.0 / math.sqrt(2.0)


def _erf(x):
    """erf(x) via the Numerical-Recipes erfc polynomial (|err| ~ 1.2e-7).

    mul/add/exp/abs/where/reciprocal only; matches PyTorch's exact (erf-based)
    nn.GELU to float32 precision.  The divide is an exact pl.reciprocal.
    """
    a = jnp.abs(x)
    t = pl.reciprocal(1.0 + 0.5 * a)          # exact reciprocal (keep numerics)
    poly = t * (
        1.00002368
        + t * (0.37409196
        + t * (0.09678418
        + t * (-0.18628806
        + t * (0.27886807
        + t * (-1.13520398
        + t * (1.48851587
        + t * (-0.82215223
        + t * 0.17087277)))))))
    )
    erfc = t * jnp.exp(-a * a - 1.26551223 + poly)
    erf_pos = 1.0 - erfc
    return jnp.where(x >= 0, erf_pos, -erf_pos)


def _gelu_exact(x):
    # PyTorch nn.GELU() default (approximate='none'): 0.5*x*(1+erf(x/sqrt(2)))
    return 0.5 * x * (1.0 + _erf(x * _INV_SQRT2))


# ------------------------------- Pallas kernels ------------------------------

def ffn_resident_kernel(x_ref, w1_ref, b1_ref, w2_ref, b2_ref, o_ref):
    """Weights-resident path: 1-D grid over token tiles, full ff per step."""
    h = jnp.dot(x_ref[...], w1_ref[...], preferred_element_type=jnp.float32)
    h = h + b1_ref[...].astype(jnp.float32)
    g = _gelu_exact(h)
    # Dropout(p=0.0) is identity -> nothing to do.
    o = jnp.dot(g.astype(w2_ref.dtype), w2_ref[...],
                preferred_element_type=jnp.float32)
    o_ref[...] = (o + b2_ref[...].astype(jnp.float32)).astype(o_ref.dtype)


def ffn_streaming_kernel(x_ref, w1_ref, b1_ref, w2_ref, b2_ref, o_ref, acc_ref):
    """Streaming path: 2-D grid (token tiles, ff chunks); ff is a reduction
    for the second matmul, accumulated in a (tm, D) f32 VMEM scratch."""
    j = pl.program_id(1)

    # Linear 1 chunk on the MXU (f32 accumulation) + bias in f32.
    h = jnp.dot(x_ref[...], w1_ref[...], preferred_element_type=jnp.float32)
    h = h + b1_ref[...].astype(jnp.float32)

    # Exact GELU (VPU/EUP), in f32.   Dropout(p=0.0) -> identity.
    g = _gelu_exact(h)

    # Linear 2 partial sum over this ff chunk (MXU, f32 accumulation).
    partial = jnp.dot(g.astype(w2_ref.dtype), w2_ref[...],
                      preferred_element_type=jnp.float32)

    @pl.when(j == 0)
    def _():  # first ff step: write directly (no zero-fill + RMW)
        acc_ref[...] = partial

    @pl.when(j > 0)
    def _():
        acc_ref[...] += partial

    @pl.when(j == pl.num_programs(1) - 1)
    def _():
        o_ref[...] = (acc_ref[...]
                      + b2_ref[...].astype(jnp.float32)).astype(o_ref.dtype)


# --------------------------------- helpers -----------------------------------

def _round_up(x, m):
    return ((x + m - 1) // m) * m


def _vmem_budget_bytes():
    """~75% of the chip's VMEM; conservative 48 MiB fallback (safe on v7x's 64 MiB)."""
    try:
        cap = getattr(pltpu.get_tpu_info(), "vmem_capacity_bytes", None)
        if cap:
            return int(cap) * 3 // 4
    except Exception:
        pass
    return 48 * 1024 * 1024


def _tff_candidates(ff, cap=4096):
    """ff-chunk sizes: divisors of ff that are multiples of 128 (descending),
    plus ff itself (a full-extent block is always layout-legal)."""
    cands = {ff}
    c = 128
    while c <= min(ff, cap):
        if ff % c == 0:
            cands.add(c)
        c += 128
    # TODO(synk): for huge ff with no 128-multiple divisor, a cdiv grid + lane
    # masking would be better than falling back to the full-ff chunk.
    return sorted(cands, reverse=True)


def _resident_footprint(tm, D, ff, xbytes, wbytes):
    act = 2 * 2 * tm * D * xbytes         # x + out tiles, double-buffered
    wts = 2 * 2 * D * ff * wbytes         # W1 + W2 (conservatively counted 2x)
    bias = 2 * (ff + D) * 4
    inter = 2 * tm * ff * 4               # h / g f32 intermediates
    return act + wts + bias + inter


def _streaming_footprint(tm, tff, D, xbytes, wbytes):
    act = 2 * 2 * tm * D * xbytes         # x + out tiles, double-buffered
    wts = 2 * 2 * D * tff * wbytes        # W1 + W2 chunks, double-buffered
    bias = 2 * (tff + D) * 4
    acc = tm * D * 4                      # f32 accumulator scratch
    inter = 2 * tm * tff * 4              # h / g f32 intermediates
    return act + wts + bias + acc + inter


_TM_CANDIDATES = (1024, 512, 256, 128, 64, 32, 16, 8)   # multiples of 256 first


def _select_tiles(M, D, ff, xbytes, wbytes, budget):
    """Pick (tm, tff, weights_resident) jointly under the VMEM budget."""
    sublane = 8 if xbytes >= 4 else (16 if xbytes == 2 else 32)
    tm_cap = _round_up(M, sublane)

    # Weights-resident fast path: take it if it fits with a decent token tile.
    for tm in _TM_CANDIDATES:
        tm_eff = min(_round_up(tm, sublane), tm_cap)
        if _resident_footprint(tm_eff, D, ff, xbytes, wbytes) <= budget:
            if tm_eff >= min(256, tm_cap):
                return tm_eff, ff, True
            break  # would need a tiny tm to keep weights resident -> stream

    # Streaming path: largest tm first (intensity ~ tm), then largest ff chunk.
    tffs = _tff_candidates(ff)
    for tm in _TM_CANDIDATES:
        tm_eff = min(_round_up(tm, sublane), tm_cap)
        for tff in tffs:
            if _streaming_footprint(tm_eff, tff, D, xbytes, wbytes) <= budget:
                return tm_eff, tff, False
    # Last resort: smallest tiles (may still be tight for extreme D/ff).
    return min(8 if sublane <= 8 else sublane, tm_cap), tffs[-1], False


# --------------------------------- wrapper ----------------------------------

@functools.partial(jax.jit,
                   static_argnames=("tm", "tff", "compute_dtype", "force_streaming"))
def feed_forward(x, w1, b1, w2, b2, *, tm=None, tff=None, compute_dtype=None,
                 force_streaming=False):
    """x: (B, S, dim) -> (B, S, dim).  w1: (dim, ff), b1: (ff,), w2: (ff, dim), b2: (dim,)."""
    B, S, D = x.shape
    ff = w1.shape[1]
    M = B * S
    out_dtype = x.dtype

    if compute_dtype is not None:
        # Optional bf16 fast mode: halves weight HBM traffic / VMEM per tile.
        # f32 accumulation + f32 GELU are kept inside the kernel.
        x = x.astype(compute_dtype)
        w1 = w1.astype(compute_dtype)
        w2 = w2.astype(compute_dtype)

    xbytes = jnp.dtype(x.dtype).itemsize
    wbytes = jnp.dtype(w1.dtype).itemsize
    sublane = 8 if xbytes >= 4 else (16 if xbytes == 2 else 32)
    budget = _vmem_budget_bytes()

    tm_sel, tff_sel, resident = _select_tiles(M, D, ff, xbytes, wbytes, budget)
    if tm is not None:
        tm_sel = tm
    if tff is not None:
        tff_sel = tff
        resident = (tff == ff)
    if force_streaming:
        resident = False

    tm_cap = _round_up(M, sublane)
    tm_eff = min(tm_sel, tm_cap)
    # Megacore (v7x has 2 TCs): if everything fits one token tile but there are
    # plenty of tokens, split in two so the "parallel" axis can shard.  Costs
    # only one extra grid step (~0.35 us) on single-TC chips.
    if tm is None and tm_eff == tm_cap and tm_cap >= 2 * max(sublane, 256):
        tm_eff = _round_up((tm_cap + 1) // 2, sublane)
    M_pad = _round_up(M, tm_eff)

    x2 = x.reshape(M, D)
    if M_pad != M:
        x2 = jnp.pad(x2, ((0, M_pad - M), (0, 0)))
    b1_2 = b1.reshape(1, ff)
    b2_2 = b2.reshape(1, D)

    grid0 = M_pad // tm_eff

    if resident:
        grid = (grid0,)
        in_specs = [
            pl.BlockSpec((tm_eff, D), lambda i: (i, 0)),   # x tile
            pl.BlockSpec((D, ff),     lambda i: (0, 0)),   # W1 (resident, DMA'd once)
            pl.BlockSpec((1, ff),     lambda i: (0, 0)),   # b1
            pl.BlockSpec((ff, D),     lambda i: (0, 0)),   # W2 (resident, DMA'd once)
            pl.BlockSpec((1, D),      lambda i: (0, 0)),   # b2
        ]
        out_spec = pl.BlockSpec((tm_eff, D), lambda i: (i, 0))
        scratch = []
        kernel = ffn_resident_kernel
        dims = ("parallel",)
        weight_reuse = 1
    else:
        assert ff % tff_sel == 0, "ff chunk must divide ff_dim"
        grid = (grid0, ff // tff_sel)
        in_specs = [
            pl.BlockSpec((tm_eff, D),  lambda i, j: (i, 0)),   # x tile
            pl.BlockSpec((D, tff_sel), lambda i, j: (0, j)),   # W1 chunk
            pl.BlockSpec((1, tff_sel), lambda i, j: (0, j)),   # b1 chunk
            pl.BlockSpec((tff_sel, D), lambda i, j: (j, 0)),   # W2 chunk
            pl.BlockSpec((1, D),       lambda i, j: (0, 0)),   # b2
        ]
        out_spec = pl.BlockSpec((tm_eff, D), lambda i, j: (i, 0))
        scratch = [pltpu.VMEM((tm_eff, D), jnp.float32)]
        kernel = ffn_streaming_kernel
        dims = ("parallel", "arbitrary")
        weight_reuse = grid0          # W1/b1/W2 re-streamed once per token tile

    w_stream_bytes = (w1.size * w1.dtype.itemsize
                      + b1.size * b1.dtype.itemsize
                      + w2.size * w2.dtype.itemsize)
    bytes_accessed = (M_pad * D * xbytes
                      + M_pad * D * jnp.dtype(out_dtype).itemsize
                      + weight_reuse * w_stream_bytes
                      + b2.size * b2.dtype.itemsize)

    out = pl.pallas_call(
        kernel,
        out_shape=jax.ShapeDtypeStruct((M_pad, D), out_dtype),
        grid_spec=pltpu.PrefetchScalarGridSpec(
            num_scalar_prefetch=0,
            grid=grid,
            in_specs=in_specs,
            out_specs=out_spec,
            scratch_shapes=scratch,
        ),
        compiler_params=pltpu.CompilerParams(
            dimension_semantics=dims,
            vmem_limit_bytes=int(budget),
        ),
        cost_estimate=pl.CostEstimate(
            flops=4 * M_pad * D * ff,
            transcendentals=M_pad * ff,
            bytes_accessed=int(bytes_accessed),
        ),
    )(x2, w1, b1_2, w2, b2_2)

    if M_pad != M:
        out = out[:M]
    return out.reshape(B, S, D)


# --------------------------------- reference --------------------------------

def feed_forward_ref(x, w1, b1, w2, b2):
    h = jnp.einsum("bsd,df->bsf", x, w1) + b1
    g = jax.nn.gelu(h, approximate=False)      # exact GELU, like nn.GELU()
    return jnp.einsum("bsf,fd->bsd", g, w2) + b2


# ----------------------------------- main ------------------------------------

if __name__ == "__main__":
    # Module config (small, consistent with FeedForward(dim, ff_dim)).
    B, S, dim, ff_dim = 2, 8, 32, 64

    key = jax.random.PRNGKey(0)
    kx, k1, k2, k3, k4 = jax.random.split(key, 5)

    # Deterministic init mimicking nn.Linear: U(-1/sqrt(fan_in), 1/sqrt(fan_in)).
    lim1 = 1.0 / math.sqrt(dim)
    lim2 = 1.0 / math.sqrt(ff_dim)
    w1 = jax.random.uniform(k1, (dim, ff_dim), jnp.float32, -lim1, lim1)
    b1 = jax.random.uniform(k2, (ff_dim,), jnp.float32, -lim1, lim1)
    w2 = jax.random.uniform(k3, (ff_dim, dim), jnp.float32, -lim2, lim2)
    b2 = jax.random.uniform(k4, (dim,), jnp.float32, -lim2, lim2)

    x = jax.random.normal(kx, (B, S, dim), jnp.float32)

    # Default path (weights-resident fast path at these shapes).
    out = jax.block_until_ready(feed_forward(x, w1, b1, w2, b2))
    ref = feed_forward_ref(x, w1, b1, w2, b2)
    assert out.shape == (B, S, dim) and out.dtype == x.dtype
    np.testing.assert_allclose(np.asarray(out), np.asarray(ref), rtol=1e-5, atol=1e-5)

    # Also exercise the streaming (ff-chunked, accumulator) kernel path on a
    # slightly larger config so that code also compiles and runs on TPU.
    dim2, ff2 = 128, 256
    kx2, k5, k6, k7, k8 = jax.random.split(jax.random.PRNGKey(1), 5)
    l1 = 1.0 / math.sqrt(dim2)
    l2 = 1.0 / math.sqrt(ff2)
    w1b = jax.random.uniform(k5, (dim2, ff2), jnp.float32, -l1, l1)
    b1b = jax.random.uniform(k6, (ff2,), jnp.float32, -l1, l1)
    w2b = jax.random.uniform(k7, (ff2, dim2), jnp.float32, -l2, l2)
    b2b = jax.random.uniform(k8, (dim2,), jnp.float32, -l2, l2)
    xb = jax.random.normal(kx2, (B, S, dim2), jnp.float32)

    out_b = jax.block_until_ready(
        feed_forward(xb, w1b, b1b, w2b, b2b, tff=128, force_streaming=True))
    ref_b = feed_forward_ref(xb, w1b, b1b, w2b, b2b)
    np.testing.assert_allclose(np.asarray(out_b), np.asarray(ref_b),
                               rtol=5e-5, atol=5e-5)

    print("KERNEL_OK")
</pallas_src>

<mosaic_0001>
module attributes {stable_mosaic.version = 11 : i64} {
  func.func @ffn_resident_kernel(%arg0: i32, %arg1: memref<16x32xf32, #tpu.memory_space<vmem>>, %arg2: memref<32x64xf32, #tpu.memory_space<vmem>>, %arg3: memref<1x64xf32, #tpu.memory_space<vmem>>, %arg4: memref<64x32xf32, #tpu.memory_space<vmem>>, %arg5: memref<1x32xf32, #tpu.memory_space<vmem>>, %arg6: memref<16x32xf32, #tpu.memory_space<vmem>>) attributes {dimension_semantics = [#tpu.dimension_semantics<parallel>], iteration_bounds = array<i64: 1>, scalar_prefetch = 0 : i64, scratch_operands = 0 : i64, tpu.core_type = #tpu.core_type<tc>, window_params = [{transform_indices = @transform_0, window_bounds = array<i64: 16, 32>}, {pipeline_mode = #tpu.pipeline_mode<synchronous>, transform_indices = @transform_1, window_bounds = array<i64: 32, 64>}, {pipeline_mode = #tpu.pipeline_mode<synchronous>, transform_indices = @transform_2, window_bounds = array<i64: 1, 64>}, {pipeline_mode = #tpu.pipeline_mode<synchronous>, transform_indices = @transform_3, window_bounds = array<i64: 64, 32>}, {pipeline_mode = #tpu.pipeline_mode<synchronous>, transform_indices = @transform_4, window_bounds = array<i64: 1, 32>}, {transform_indices = @transform_5, window_bounds = array<i64: 16, 32>}]} {
    %c0 = arith.constant 0 : index
    %c0_0 = arith.constant 0 : index
    %0 = vector.load %arg1[%c0, %c0_0] : memref<16x32xf32, #tpu.memory_space<vmem>>, vector<16x32xf32>
    %c0_1 = arith.constant 0 : index
    %c0_2 = arith.constant 0 : index
    %1 = vector.load %arg2[%c0_1, %c0_2] : memref<32x64xf32, #tpu.memory_space<vmem>>, vector<32x64xf32>
    %cst = arith.constant dense<0.000000e+00> : vector<16x64xf32>
    %2 = tpu.matmul %0, %1, %cst {dimension_numbers = #tpu.dot_dimension_numbers<[1], [0], [0], [1], [0, 0, 1, 1], [], []>} : vector<16x32xf32>, vector<32x64xf32>, vector<16x64xf32> -> vector<16x64xf32>
    %c0_3 = arith.constant 0 : index
    %c0_4 = arith.constant 0 : index
    %3 = vector.load %arg3[%c0_3, %c0_4] : memref<1x64xf32, #tpu.memory_space<vmem>>, vector<1x64xf32>
    %4 = vector.broadcast %3 : vector<1x64xf32> to vector<16x64xf32>
    %5 = arith.addf %2, %4 : vector<16x64xf32>
    %cst_5 = arith.constant 5.000000e-01 : f32
    %6 = vector.broadcast %cst_5 : f32 to vector<16x64xf32>
    %7 = arith.mulf %6, %5 : vector<16x64xf32>
    %cst_6 = arith.constant 0.707106769 : f32
    %8 = vector.broadcast %cst_6 : f32 to vector<16x64xf32>
    %9 = arith.mulf %5, %8 : vector<16x64xf32>
    %10 = math.absf %9 : vector<16x64xf32>
    %cst_7 = arith.constant 5.000000e-01 : f32
    %11 = vector.broadcast %cst_7 : f32 to vector<16x64xf32>
    %12 = arith.mulf %11, %10 : vector<16x64xf32>
    %cst_8 = arith.constant 1.000000e+00 : f32
    %13 = vector.broadcast %cst_8 : f32 to vector<16x64xf32>
    %14 = arith.addf %13, %12 : vector<16x64xf32>
    %15 = tpu.reciprocal %14 : vector<16x64xf32> -> vector<16x64xf32>
    %cst_9 = arith.constant 0.170872763 : f32
    %16 = vector.broadcast %cst_9 : f32 to vector<16x64xf32>
    %17 = arith.mulf %15, %16 : vector<16x64xf32>
    %cst_10 = arith.constant -0.822152256 : f32
    %18 = vector.broadcast %cst_10 : f32 to vector<16x64xf32>
    %19 = arith.addf %18, %17 : vector<16x64xf32>
    %20 = arith.mulf %15, %19 : vector<16x64xf32>
    %cst_11 = arith.constant 1.48851585 : f32
    %21 = vector.broadcast %cst_11 : f32 to vector<16x64xf32>
    %22 = arith.addf %21, %20 : vector<16x64xf32>
    %23 = arith.mulf %15, %22 : vector<16x64xf32>
    %cst_12 = arith.constant -1.13520396 : f32
    %24 = vector.broadcast %cst_12 : f32 to vector<16x64xf32>
    %25 = arith.addf %24, %23 : vector<16x64xf32>
    %26 = arith.mulf %15, %25 : vector<16x64xf32>
    %cst_13 = arith.constant 0.278868079 : f32
    %27 = vector.broadcast %cst_13 : f32 to vector<16x64xf32>
    %28 = arith.addf %27, %26 : vector<16x64xf32>
    %29 = arith.mulf %15, %28 : vector<16x64xf32>
    %cst_14 = arith.constant -0.186288059 : f32
    %30 = vector.broadcast %cst_14 : f32 to vector<16x64xf32>
    %31 = arith.addf %30, %29 : vector<16x64xf32>
    %32 = arith.mulf %15, %31 : vector<16x64xf32>
    %cst_15 = arith.constant 0.0967841818 : f32
    %33 = vector.broadcast %cst_15 : f32 to vector<16x64xf32>
    %34 = arith.addf %33, %32 : vector<16x64xf32>
    %35 = arith.mulf %15, %34 : vector<16x64xf32>
    %cst_16 = arith.constant 0.374091953 : f32
    %36 = vector.broadcast %cst_16 : f32 to vector<16x64xf32>
    %37 = arith.addf %36, %35 : vector<16x64xf32>
    %38 = arith.mulf %15, %37 : vector<16x64xf32>
    %cst_17 = arith.constant 1.00002372 : f32
    %39 = vector.broadcast %cst_17 : f32 to vector<16x64xf32>
    %40 = arith.addf %39, %38 : vector<16x64xf32>
    %41 = arith.mulf %15, %40 : vector<16x64xf32>
    %cst_18 = arith.constant 0.000000e+00 : f32
    %42 = vector.broadcast %cst_18 : f32 to vector<16x64xf32>
    %43 = arith.subf %42, %10 : vector<16x64xf32>
    %44 = arith.mulf %43, %10 : vector<16x64xf32>
    %cst_19 = arith.constant 1.26551223 : f32
    %45 = vector.broadcast %cst_19 : f32 to vector<16x64xf32>
    %46 = arith.subf %44, %45 : vector<16x64xf32>
    %47 = arith.addf %46, %41 : vector<16x64xf32>
    %48 = math.exp %47 : vector<16x64xf32>
    %49 = arith.mulf %15, %48 : vector<16x64xf32>
    %cst_20 = arith.constant 1.000000e+00 : f32
    %50 = vector.broadcast %cst_20 : f32 to vector<16x64xf32>
    %51 = arith.subf %50, %49 : vector<16x64xf32>
    %cst_21 = arith.constant 0.000000e+00 : f32
    %52 = vector.broadcast %cst_21 : f32 to vector<16x64xf32>
    %53 = arith.cmpf oge, %9, %52 : vector<16x64xf32>
    %cst_22 = arith.constant 0.000000e+00 : f32
    %54 = vector.broadcast %cst_22 : f32 to vector<16x64xf32>
    %55 = arith.subf %54, %51 : vector<16x64xf32>
    %56 = arith.select %53, %51, %55 : vector<16x64xi1>, vector<16x64xf32>
    %cst_23 = arith.constant 1.000000e+00 : f32
    %57 = vector.broadcast %cst_23 : f32 to vector<16x64xf32>
    %58 = arith.addf %57, %56 : vector<16x64xf32>
    %59 = arith.mulf %7, %58 : vector<16x64xf32>
    %c0_24 = arith.constant 0 : index
    %c0_25 = arith.constant 0 : index
    %60 = vector.load %arg4[%c0_24, %c0_25] : memref<64x32xf32, #tpu.memory_space<vmem>>, vector<64x32xf32>
    %cst_26 = arith.constant dense<0.000000e+00> : vector<16x32xf32>
    %61 = tpu.matmul %59, %60, %cst_26 {dimension_numbers = #tpu.dot_dimension_numbers<[1], [0], [0], [1], [0, 0, 1, 1], [], []>} : vector<16x64xf32>, vector<64x32xf32>, vector<16x32xf32> -> vector<16x32xf32>
    %c0_27 = arith.constant 0 : index
    %c0_28 = arith.constant 0 : index
    %62 = vector.load %arg5[%c0_27, %c0_28] : memref<1x32xf32, #tpu.memory_space<vmem>>, vector<1x32xf32>
    %63 = vector.broadcast %62 : vector<1x32xf32> to vector<16x32xf32>
    %64 = arith.addf %61, %63 : vector<16x32xf32>
    %c0_29 = arith.constant 0 : index
    %c0_30 = arith.constant 0 : index
    %65 = vector.load %arg6[%c0_29, %c0_30] : memref<16x32xf32, #tpu.memory_space<vmem>>, vector<16x32xf32>
    tpu.vector_store %arg6[%c0_29, %c0_30], %64 {strides = array<i32>} : memref<16x32xf32, #tpu.memory_space<vmem>>, vector<16x32xf32>,
    return
  }
  func.func @transform_0(%arg0: i32) -> (i32, i32) {
    %c0_i32 = arith.constant 0 : i32
    %c0_i32_0 = arith.constant 0 : i32
    return %arg0, %c0_i32 : i32, i32
  }
  func.func @transform_1(%arg0: i32) -> (i32, i32) {
    %c0_i32 = arith.constant 0 : i32
    %c0_i32_0 = arith.constant 0 : i32
    %c0_i32_1 = arith.constant 0 : i32
    return %c0_i32, %c0_i32_0 : i32, i32
  }
  func.func @transform_2(%arg0: i32) -> (i32, i32) {
    %c0_i32 = arith.constant 0 : i32
    %c0_i32_0 = arith.constant 0 : i32
    %c0_i32_1 = arith.constant 0 : i32
    return %c0_i32, %c0_i32_0 : i32, i32
  }
  func.func @transform_3(%arg0: i32) -> (i32, i32) {
    %c0_i32 = arith.constant 0 : i32
    %c0_i32_0 = arith.constant 0 : i32
    %c0_i32_1 = arith.constant 0 : i32
    return %c0_i32, %c0_i32_0 : i32, i32
  }
  func.func @transform_4(%arg0: i32) -> (i32, i32) {
    %c0_i32 = arith.constant 0 : i32
    %c0_i32_0 = arith.constant 0 : i32
    %c0_i32_1 = arith.constant 0 : i32
    return %c0_i32, %c0_i32_0 : i32, i32
  }
  func.func @transform_5(%arg0: i32) -> (i32, i32) {
    %c0_i32 = arith.constant 0 : i32
    %c0_i32_0 = arith.constant 0 : i32
    return %arg0, %c0_i32 : i32, i32
  }
}

</mosaic_0001>

<bundles_post_ra>
// kernel: feed_forward.1
= control target key start
LH: loop header
LB: loop body
LE: loop exit
PB: predicated region body
PF: predicated region fallthrough
CT: control target
= control target key end

     0   :  { %vm34_vm0 = vcmask 261120   ;;  %s529_s0 = inlined_call_operand.vmem [shape: f32[16,32], index: 0, kind: input, shape index: {}]   ;;  %s530_s1 = inlined_call_operand.vmem [shape: f32[32,64], index: 1, kind: input, shape index: {}]   ;;  %s531_s2 = inlined_call_operand.vmem [shape: f32[1,64], index: 2, kind: input, shape index: {}]   ;;  %s532_s3 = inlined_call_operand.vmem [shape: f32[64,32], index: 3, kind: input, shape index: {}]   ;;  %s533_s4 = inlined_call_operand.vmem [shape: f32[1,32], index: 4, kind: input, shape index: {}]   ;;  %s534_s5 = inlined_call_operand.hbm [shape: f32[16,32], index: 5, kind: output, shape index: {}]  }
   0x1   :  { %v23_v0 = vld [vmem:[%s530_s1] sm:$0xff]  ;;  %v24_v1 = vld [vmem:[%s530_s1 + $0x8] sm:$0xff]  ;;  %v25_v2 = vld [vmem:[%s530_s1 + $0x10] sm:$0xff] }
   0x2   :  { %v357_v3 = vpack.c.bf16 %v24_v1, %v23_v0  ;;  %v26_v4 = vld [vmem:[%s530_s1 + $0x18] sm:$0xff]  ;;  %v21_v5 = vld [vmem:[%s529_s0] sm:$0xff] }
   0x3   :  { %v361_v6 = vpack.c.bf16 %v26_v4, %v25_v2  ;;  %335 = vmatprep.mubr.msk.f32.mxu0 %vm34_vm0, %v21_v5 }
   0x4   :  { %10 = vsyncpa [#allocation3], 0  ;;  %358 = vmatprep.subr.bf16.mxu0 %v357_v3  ;;  %v22_v7 = vld [vmem:[%s529_s0 + $0x8] sm:$0xff]  ;;  %v188_v8 = vld [vmem:[%s532_s3] sm:$0xff]  ;;  %vm203_vm3 = vcmask 523264   ;;  %s416_s21 = smov [#allocation2]  }
   0x5   :  { %360 = vmatpush3.bf16.msra.mxu0 %v357_v3  ;;  %v189_v9 = vld [vmem:[%s532_s3 + $0x8] sm:$0xff]  ;;  %v190_v11 = vld [vmem:[%s532_s3 + $0x10] sm:$0xff]  ;;  %v191_v12 = vld [vmem:[%s532_s3 + $0x18] sm:$0xff]  ;;  %s292_s22 = sshll.u32 %s416_s21, 4  ;;  %s293_s22 = int_to_ptr.vmem [resolvable:$true] %s292_s22 }
   0x6   :  { %362 = vmatprep.subr.bf16.mxu0 %v361_v6  ;;  %v365_v10 = vpack.c.bf16 %v189_v9, %v188_v8  ;;  %v369_v13 = vpack.c.bf16 %v191_v12, %v190_v11  ;;  %v192_v14 = vld [vmem:[%s532_s3 + $0x20] sm:$0xff]  ;;  %v193_v15 = vld [vmem:[%s532_s3 + $0x28] sm:$0xff]  ;;  %v194_v17 = vld [vmem:[%s532_s3 + $0x30] sm:$0xff]  ;;  %s392_s23 = scalar_lea.vmem %s293_s22, 256  ;;  %p397_p1 = scmp.lt.s32.totalorder %s293_s22, %s293_s22 }
   0x7   :  { %v373_v16 = vpack.c.bf16 %v193_v15, %v192_v14  ;;  %v195_v18 = vld [vmem:[%s532_s3 + $0x38] sm:$0xff]  ;;  %v303_v20 = vld [vmem:[%s531_s2] ss:$0 sm:$0xff]  ;;  %p393_p0 = scmp.ne.s32.totalorder %s293_s22, %s392_s23  ;;  %p398_p2 = scmp.lt.s32.totalorder %s392_s23, %s392_s23 }
   0x8   :  { %366 = vmatprep.subr.bf16.mxu1 %v365_v10  ;;  %v377_v19 = vpack.c.bf16 %v195_v18, %v194_v17 }
   0x9   :  { %364 = vmatpush3.bf16.msra.mxu0 %v361_v6  ;;  %368 = vmatpush3.bf16.msra.mxu1 %v365_v10  ;;  %p399_p3 = por %p398_p2, %p397_p1 }
   0xa   :  { %370 = vmatprep.subr.bf16.mxu1 %v369_v13 }
   0xb   :  { %p400_p4 = pnand %p399_p3, %p393_p0 }
   0xc   :  { %336 = vmatmul.mubr.msk.f32.vlgmr.msra.gmra.mrb[0].mxu0 %vm34_vm0, %v22_v7 }
   0xd   :  { %372 = vmatpush3.bf16.msra.mxu1 %v369_v13 }
   0xe   :  { %374 = vmatprep.subr.bf16.mxu1 %v373_v16 }
  0x11   :  { %376 = vmatpush3.bf16.msra.mxu1 %v373_v16 }
  0x12   :  { %378 = vmatprep.subr.bf16.mxu1 %v377_v19 }
  0x15   :  { %380 = vmatpush3.bf16.msra.mxu1 %v377_v19 }
  0xdf   :  { %v337_v21 = vpop.f32.mrb[0].mxu0 }
  0xe0   :  { %v496_v22 = vadd.f32 %v337_v21, %v303_v20  ;;  %v107_v23 = vpop.f32.mrb[1].mxu0 }
  0xe1   :  { %v498_v24 = vadd.f32 %v303_v20, %v107_v23 }
  0xe2   :  { %v501_v25 = vmul.f32 0.70710677, %v496_v22 }
  0xe3   :  { %v504_v26 = vmul.f32 0.70710677, %v498_v24 }
  0xe4   :  { %v121_v27 = vand.u32 2147483647, %v501_v25  ;;  %vm179_vm1 = vcmp.ge.f32.partialorder %v501_v25, 0.0  ;;  %v308_v25 = vld [vmem:[%s533_s4] ss:$0 sm:$0xff] }
  0xe5   :  { %v120_v28 = vand.u32 2147483647, %v504_v26  ;;  %vm178_vm2 = vcmp.ge.f32.partialorder %v504_v26, 0.0 }
  0xe6   :  { %v123_v29 = vmul.f32 0.5, %v121_v27  ;;  %v163_v60 = vsub.f32 0.0, %v121_v27 }
  0xe7   :  { %v122_v30 = vmul.f32 0.5, %v120_v28  ;;  %v162_v62 = vsub.f32 0.0, %v120_v28 }
  0xe8   :  { %v125_v31 = vadd.f32 1.0, %v123_v29  ;;  %v165_v2 = vmul.f32 %v163_v60, %v121_v27 }
  0xe9   :  { %v124_v32 = vadd.f32 1.0, %v122_v30  ;;  %v164_v4 = vmul.f32 %v162_v62, %v120_v28  ;;  %v117_v28 = vmul.f32 0.5, %v496_v22 }
  0xea   :  { %384 = vrcp.f32 %v125_v31  ;;  %v307_v8 = vadd.f32 -1.2655122, %v165_v2  ;;  %v116_v31 = vmul.f32 0.5, %v498_v24 }
  0xeb   :  { %386 = vrcp.f32 %v124_v32  ;;  %v306_v10 = vadd.f32 -1.2655122, %v164_v4 }
  0xf4   :  { %v385_v33 = vpop.eup %384 }
  0xf5   :  { %v387_v34 = vpop.eup %386  ;;  %v129_v35 = vmul.f32 0.17087276, %v385_v33 }
  0xf6   :  { %v128_v36 = vmul.f32 0.17087276, %v387_v34 }
  0xf7   :  { %v131_v37 = vadd.f32 -0.82215226, %v129_v35 }
  0xf8   :  { %v130_v38 = vadd.f32 -0.82215226, %v128_v36 }
  0xf9   :  { %v133_v39 = vmul.f32 %v385_v33, %v131_v37 }
  0xfa   :  { %v132_v40 = vmul.f32 %v387_v34, %v130_v38 }
  0xfb   :  { %v135_v41 = vadd.f32 1.4885159, %v133_v39 }
  0xfc   :  { %v134_v42 = vadd.f32 1.4885159, %v132_v40 }
  0xfd   :  { %v137_v43 = vmul.f32 %v385_v33, %v135_v41 }
  0xfe   :  { %v136_v44 = vmul.f32 %v387_v34, %v134_v42 }
  0xff   :  { %v139_v45 = vadd.f32 -1.135204, %v137_v43 }
 0x100   :  { %v138_v46 = vadd.f32 -1.135204, %v136_v44 }
 0x101   :  { %v141_v47 = vmul.f32 %v385_v33, %v139_v45 }
 0x102   :  { %v140_v48 = vmul.f32 %v387_v34, %v138_v46 }
 0x103   :  { %v143_v49 = vadd.f32 0.27886808, %v141_v47 }
 0x104   :  { %v142_v50 = vadd.f32 0.27886808, %v140_v48 }
 0x105   :  { %v145_v51 = vmul.f32 %v385_v33, %v143_v49 }
 0x106   :  { %v144_v52 = vmul.f32 %v387_v34, %v142_v50 }
 0x107   :  { %v147_v53 = vadd.f32 -0.18628806, %v145_v51 }
 0x108   :  { %v146_v54 = vadd.f32 -0.18628806, %v144_v52 }
 0x109   :  { %v149_v55 = vmul.f32 %v385_v33, %v147_v53 }
 0x10a   :  { %v148_v56 = vmul.f32 %v387_v34, %v146_v54 }
 0x10b   :  { %v151_v57 = vadd.f32 0.09678418, %v149_v55 }
 0x10c   :  { %v150_v58 = vadd.f32 0.09678418, %v148_v56 }
 0x10d   :  { %v153_v59 = vmul.f32 %v385_v33, %v151_v57 }
 0x10e   :  { %v152_v61 = vmul.f32 %v387_v34, %v150_v58 }
 0x10f   :  { %v155_v63 = vadd.f32 0.37409195, %v153_v59 }
 0x110   :  { %v154_v0 = vadd.f32 0.37409195, %v152_v61 }
 0x111   :  { %v157_v1 = vmul.f32 %v385_v33, %v155_v63 }
 0x112   :  { %v156_v3 = vmul.f32 %v387_v34, %v154_v0 }
 0x113   :  { %v159_v5 = vadd.f32 1.0000237, %v157_v1 }
 0x114   :  { %v158_v6 = vadd.f32 1.0000237, %v156_v3 }
 0x115   :  { %v161_v7 = vmul.f32 %v385_v33, %v159_v5 }
 0x116   :  { %v160_v9 = vmul.f32 %v387_v34, %v158_v6 }
 0x117   :  { %v169_v11 = vadd.f32 %v307_v8, %v161_v7 }
 0x118   :  { %v168_v12 = vadd.f32 %v306_v10, %v160_v9 }
 0x119   :  { %v172_v13 = vmul.f32 1.442695, %v169_v11 }
 0x11a   :  { %v170_v14 = vmul.f32 1.442695, %v168_v12 }
 0x11b   :  { %388 = vpow2.f32 %v172_v13 }
 0x11c   :  { %390 = vpow2.f32 %v170_v14 }
 0x125   :  { %v389_v15 = vpop.eup %388 }
 0x126   :  { %v391_v16 = vpop.eup %390  ;;  %v175_v17 = vmul.f32 %v389_v15, %v385_v33 }
 0x127   :  { %v174_v18 = vmul.f32 %v391_v16, %v387_v34 }
 0x128   :  { %v177_v19 = vsub.f32 1.0, %v175_v17 }
 0x129   :  { %v176_v20 = vsub.f32 1.0, %v174_v18 }
 0x12a   :  { %v181_v21 = vsub.f32 0.0, %v177_v19 }
 0x12b   :  { %v180_v23 = vsub.f32 0.0, %v176_v20 }
 0x12c   :  { %v183_v27 = vsel %vm179_vm1, %v177_v19, %v181_v21 }
 0x12d   :  { %v185_v29 = vadd.f32 1.0, %v183_v27  ;;  %v182_v30 = vsel %vm178_vm2, %v176_v20, %v180_v23 }
 0x12e   :  { %v184_v32 = vadd.f32 1.0, %v182_v30 }
 0x12f   :  { %v187_v35 = vmul.f32 %v185_v29, %v117_v28 }
 0x130   :  { %v186_v33 = vmul.f32 %v184_v32, %v116_v31 }
 0x132   :  { %354 = vmatprep.mubr.msk.f32.mxu1 %vm203_vm3, %v186_v33 }
 0x133   :  { %355 = vmatmul.mubr.msk.f32.vlgmr.msra.gmra.mrb[0].mxu1 %vm203_vm3, %v187_v35 }
 0x206   :  { %v356_v34 = vpop.f32.mrb[0].mxu1 }
 0x207   :  { %v282_v26 = vadd.f32 %v356_v34, %v308_v25  ;;  %v276_v36 = vpop.f32.mrb[1].mxu1 }
 0x208   :  { %v277_v22 = vadd.f32 %v308_v25, %v276_v36 }
 0x209   :  { %286 = vst.msk [vmem:[#allocation2 + $0x8] sm:$0xff] %vm34_vm0, %v282_v26 }
 0x20a   :  { %285 = vst.msk [vmem:[#allocation2] sm:$0xff] %vm34_vm0, %v277_v22 }
 0x20b   :  { %403 = shalt.err (!%p400_p4)
}
 0x20c   :  { %s404_s25 = scalar_lea.hbm %s534_s5, 256 }
 0x20d   :  { %p405_p5 = scmp.ne.s32.totalorder %s534_s5, %s404_s25  ;;  %p408_p6 = scmp.lt.u32.totalorder %s404_s25, %s534_s5 }
 0x20f   :  { %p410_p7 = pnand %p408_p6, %p405_p5 }
 0x211   :  { %413 = shalt.err (!%p410_p7)
}
 0x212   :  { %s417_s30 = smov 128   ;;  %s418_s1 = smov 8  }
 0x213   :  { %298 = dma.vmem_to_hbm [thread:$0]  %s293_s22, 256, %s534_s5, [#allocation3], %s417_s30, %s417_s30, %s418_s1  }
 0x214   :  { %414 = dma.done.wait [#allocation3], 256  }
 0x215   :  { %415 = vsyncadd [#allocation3], 4294967040 }
 0x216   :  { %302 = vsyncpa [#allocation3], 1 }

</bundles_post_ra>
